<compile_context>
chip_gen: v5e
topology: v5e:2x2
jax: 0.10.0
libtpu: 0.0.40
codegen_flags: <defaults>
</compile_context>

<pallas_src>
import math

import jax
import jax.numpy as jnp
from jax.experimental import pallas as pl
from jax.experimental.pallas import tpu as pltpu

_INV_SQRT2 = 0.7071067811865476
_VOCAB_TILE = 512


# ------------------------------ small helpers --------------------------------

def _round_up(x, m):
    return ((x + m - 1) // m) * m


def _pick_tile(n, candidates=(512, 256, 128, 64, 32, 16, 8)):
    for c in candidates:
        if n % c == 0:
            return c
    return n


_VMEM_LIMIT_CACHE = None


def _vmem_limit_bytes():
    """Scoped VMEM limit: most of physical VMEM, capped at 112 MiB."""
    global _VMEM_LIMIT_CACHE
    if _VMEM_LIMIT_CACHE is None:
        cap = 64 * 1024 * 1024                      # safe default (v7x physical)
        try:
            info_cap = int(pltpu.get_tpu_info().vmem_capacity_bytes)
            if info_cap >= 16 * 1024 * 1024:
                cap = info_cap
        except Exception:
            pass
        _VMEM_LIMIT_CACHE = int(min(cap * 7 // 8, 112 * 1024 * 1024))
    return _VMEM_LIMIT_CACHE


_BUFFERED_OK = None


def _buffered_supported():
    """Probe once whether BlockSpec(pipeline_mode=pl.Buffered(1)) works here."""
    global _BUFFERED_OK
    if _BUFFERED_OK is not None:
        return _BUFFERED_OK
    try:
        def probe_kernel(x_ref, o_ref):
            o_ref[...] = x_ref[...] + 1.0

        out = pl.pallas_call(
            probe_kernel,
            out_shape=jax.ShapeDtypeStruct((8, 128), jnp.float32),
            grid=(2, 2),
            in_specs=[pl.BlockSpec((8, 128), lambda i, j: (0, 0),
                                   pipeline_mode=pl.Buffered(1))],
            out_specs=pl.BlockSpec((8, 128), lambda i, j: (0, 0)),
        )(jnp.zeros((8, 128), jnp.float32))
        jax.block_until_ready(out)
        _BUFFERED_OK = True
    except Exception:
        _BUFFERED_OK = False
    return _BUFFERED_OK


def _resident_spec(shape, index_map):
    """BlockSpec for operands whose block index never changes (weights/biases):
    single-buffer them (saves half the weight VMEM) when supported."""
    if _buffered_supported():
        return pl.BlockSpec(shape, index_map, pipeline_mode=pl.Buffered(1))
    return pl.BlockSpec(shape, index_map)


def _cparams(n_axes):
    return pltpu.CompilerParams(
        dimension_semantics=("parallel",) * n_axes,
        vmem_limit_bytes=_vmem_limit_bytes())


# ----------------------------- in-kernel math --------------------------------

def _gelu(x):
    # exact GELU (reference uses the no-approximation erf form)
    return x * 0.5 * (1.0 + jax.lax.erf(x * jnp.float32(_INV_SQRT2)))


def _layernorm(x, w, b, eps=1e-5):
    # f32 math regardless of input dtype; rsqrt routes to the EUP
    x = x.astype(jnp.float32)
    mean = jnp.mean(x, axis=-1, keepdims=True)
    c = x - mean
    var = jnp.mean(c * c, axis=-1, keepdims=True)
    return c * jax.lax.rsqrt(var + eps) * w + b


# --------------------------------- kernels ------------------------------------

def embed_ln_kernel(tok_ref, pos_ref, typ_ref, g_ref, b_ref, out_ref):
    # tok/pos: (ts, H) f32; typ/g/b: (1, H) f32  (token types are all zero)
    x = tok_ref[...] + pos_ref[...] + typ_ref[...]
    out_ref[...] = _layernorm(x, g_ref[...], b_ref[...]).astype(out_ref.dtype)


def qkv_proj_kernel(x_ref, w_ref, b_ref, q_ref, k_ref, v_ref):
    # x: (tr, H) bf16; w: (H, 3H) bf16; b: (1, 3H) f32
    H = q_ref.shape[1]
    y = jnp.dot(x_ref[...], w_ref[...],
                preferred_element_type=jnp.float32) + b_ref[...]
    q_ref[...] = y[:, :H].astype(q_ref.dtype)          # already scaled by 1/sqrt(hd)
    k_ref[...] = y[:, H:2 * H].astype(k_ref.dtype)
    v_ref[...] = y[:, 2 * H:].astype(v_ref.dtype)


def attention_kernel(q_ref, k_ref, v_ref, out_ref):
    # q: (nh, tq, hd) bf16 (pre-scaled); k/v: (nh, S, hd) bf16  -> out: (nh, tq, hd)
    q = q_ref[...]
    k = k_ref[...]
    v = v_ref[...]
    logits = jnp.einsum('hqd,hkd->hqk', q, k,
                        preferred_element_type=jnp.float32)      # (nh, tq, S)
    logits = logits - jnp.max(logits, axis=-1, keepdims=True)
    p = jnp.exp(logits)
    denom = jnp.sum(p, axis=-1, keepdims=True)
    p = p * pl.reciprocal(denom, approx=True)                    # softmax (EUP recip)
    heads = jnp.einsum('hqk,hkd->hqd', p.astype(jnp.bfloat16), v,
                       preferred_element_type=jnp.float32)       # (nh, tq, hd)
    out_ref[...] = heads.astype(out_ref.dtype)


def outproj_ln_kernel(a_ref, x_ref, wo_ref, bo_ref, g_ref, b_ref, out_ref):
    # a: merged heads (tr, H) bf16; x: block input residual (tr, H) bf16
    y = jnp.dot(a_ref[...], wo_ref[...],
                preferred_element_type=jnp.float32) + bo_ref[...]
    out_ref[...] = _layernorm(y + x_ref[...].astype(jnp.float32),
                              g_ref[...], b_ref[...]).astype(out_ref.dtype)


def mlp_ln_kernel(x_ref, w1_ref, b1_ref, w2_ref, b2_ref, g_ref, b_ref, out_ref):
    # x: (tr, H) bf16 -> GELU(x@W1+b1)@W2+b2, residual, LayerNorm2
    x = x_ref[...]
    h = _gelu(jnp.dot(x, w1_ref[...],
                      preferred_element_type=jnp.float32) + b1_ref[...])
    y = jnp.dot(h.astype(jnp.bfloat16), w2_ref[...],
                preferred_element_type=jnp.float32) + b2_ref[...]
    out_ref[...] = _layernorm(y + x.astype(jnp.float32),
                              g_ref[...], b_ref[...]).astype(out_ref.dtype)


def head_ln_kernel(x_ref, wl_ref, bl_ref, g_ref, b_ref, out_ref):
    # rows-tiled: LN(GELU(x @ lin_w + lin_b))
    h = _gelu(jnp.dot(x_ref[...], wl_ref[...],
                      preferred_element_type=jnp.float32) + bl_ref[...])
    out_ref[...] = _layernorm(h, g_ref[...], b_ref[...]).astype(out_ref.dtype)


def unembed_kernel(n_ref, w_ref, b_ref, out_ref):
    # vocab-tiled unembedding; n stays VMEM-resident across the vocab grid
    out_ref[...] = jnp.dot(n_ref[...], w_ref[...],
                           preferred_element_type=jnp.float32) + b_ref[...]


# ------------------------------ parameter init --------------------------------

def init_params(key, vocab_size, hidden_size, max_position_embeddings,
                type_vocab_size, intermediate_size, num_layers):
    keys = iter(jax.random.split(key, 5 + 6 * num_layers))

    def nrm(shape, scale=0.02):
        return (scale * jax.random.normal(next(keys), shape)).astype(jnp.float32)

    ones = lambda shape: jnp.ones(shape, jnp.float32)
    zeros = lambda shape: jnp.zeros(shape, jnp.float32)

    params = {
        'tok_emb': jax.random.normal(next(keys), (vocab_size, hidden_size),
                                     jnp.float32),
        'pos_emb': jax.random.normal(next(keys), (max_position_embeddings,
                                                  hidden_size), jnp.float32),
        'typ_emb': jax.random.normal(next(keys), (type_vocab_size, hidden_size),
                                     jnp.float32),
        'emb_ln_w': ones((1, hidden_size)),
        'emb_ln_b': zeros((1, hidden_size)),
        'blocks': [],
        'lin_w': nrm((hidden_size, hidden_size)),
        'lin_b': zeros((1, hidden_size)),
        'ln_w': ones((1, hidden_size)),
        'ln_b': zeros((1, hidden_size)),
        'unembed_w': nrm((hidden_size, vocab_size)),
        'unembed_b': zeros((1, vocab_size)),
    }
    for _ in range(num_layers):
        params['blocks'].append({
            'wq': nrm((hidden_size, hidden_size)), 'bq': zeros((1, hidden_size)),
            'wk': nrm((hidden_size, hidden_size)), 'bk': zeros((1, hidden_size)),
            'wv': nrm((hidden_size, hidden_size)), 'bv': zeros((1, hidden_size)),
            'wo': nrm((hidden_size, hidden_size)), 'bo': zeros((1, hidden_size)),
            'ln1_w': ones((1, hidden_size)), 'ln1_b': zeros((1, hidden_size)),
            'w1': nrm((hidden_size, intermediate_size)),
            'b1': zeros((1, intermediate_size)),
            'w2': nrm((intermediate_size, hidden_size)),
            'b2': zeros((1, hidden_size)),
            'ln2_w': ones((1, hidden_size)), 'ln2_b': zeros((1, hidden_size)),
        })
    return params


def prepare_params(params, num_heads):
    """One-time preparation: fuse QKV, fold 1/sqrt(hd), cast matmul weights to
    bf16, pad the unembedding to a lane-dense vocab tile."""
    bf16 = jnp.bfloat16
    H = params['tok_emb'].shape[1]
    V = params['tok_emb'].shape[0]
    assert H % num_heads == 0
    scale = jnp.float32(1.0 / math.sqrt(H // num_heads))

    blocks = []
    for blk in params['blocks']:
        w_qkv = jnp.concatenate([blk['wq'] * scale, blk['wk'], blk['wv']],
                                axis=1).astype(bf16)
        b_qkv = jnp.concatenate([blk['bq'] * scale, blk['bk'], blk['bv']], axis=1)
        blocks.append({
            'w_qkv': w_qkv, 'b_qkv': b_qkv,
            'wo': blk['wo'].astype(bf16), 'bo': blk['bo'],
            'ln1_w': blk['ln1_w'], 'ln1_b': blk['ln1_b'],
            'w1': blk['w1'].astype(bf16), 'b1': blk['b1'],
            'w2': blk['w2'].astype(bf16), 'b2': blk['b2'],
            'ln2_w': blk['ln2_w'], 'ln2_b': blk['ln2_b'],
        })

    V_pad = _round_up(V, _VOCAB_TILE)
    wu = params['unembed_w']
    bu = params['unembed_b']
    if V_pad != V:
        wu = jnp.pad(wu, ((0, 0), (0, V_pad - V)))
        bu = jnp.pad(bu, ((0, 0), (0, V_pad - V)))

    return {
        'tok_emb': params['tok_emb'],
        'pos_emb': params['pos_emb'],
        'typ_row': params['typ_emb'][0:1],          # token_type_ids are all zero
        'emb_ln_w': params['emb_ln_w'], 'emb_ln_b': params['emb_ln_b'],
        'blocks': blocks,
        'lin_w': params['lin_w'].astype(bf16), 'lin_b': params['lin_b'],
        'ln_w': params['ln_w'], 'ln_b': params['ln_b'],
        'unembed_w': wu.astype(bf16), 'unembed_b': bu,
        'vocab_size': V,
    }


# --------------------------------- forward ------------------------------------

def bert_forward(fp, input_ids, num_heads):
    B, S = input_ids.shape
    H = fp['tok_emb'].shape[1]
    I = fp['blocks'][0]['w1'].shape[1]
    V = fp['vocab_size']
    V_pad = fp['unembed_w'].shape[1]
    hd = H // num_heads
    R = B * S
    bf16 = jnp.bfloat16

    tr = _pick_tile(R)                              # row tile for (R, H) kernels
    ts = _pick_tile(S)                              # seq tile for the embed kernel
    tq = _pick_tile(S, (256, 128, 64, 32, 16, 8))   # query tile for attention
    tv = min(_VOCAB_TILE, V_pad)                    # vocab tile for unembedding

    cp1 = _cparams(1)
    cp2 = _cparams(2)

    row_spec = pl.BlockSpec((tr, H), lambda i: (i, 0))

    def const1(shape):                              # resident across a 1-D grid
        return _resident_spec(shape, lambda i: (0,) * len(shape))

    # ---- embeddings: token gather (JAX glue), pos/type indexed by BlockSpec ----
    tok = fp['tok_emb'][input_ids]                  # (B, S, H) f32 gather
    x3 = pl.pallas_call(
        embed_ln_kernel,
        out_shape=jax.ShapeDtypeStruct((B, S, H), bf16),
        grid=(B, S // ts),
        in_specs=[pl.BlockSpec((None, ts, H), lambda b, s: (b, s, 0)),
                  pl.BlockSpec((ts, H), lambda b, s: (s, 0)),        # pos table
                  _resident_spec((1, H), lambda b, s: (0, 0)),
                  _resident_spec((1, H), lambda b, s: (0, 0)),
                  _resident_spec((1, H), lambda b, s: (0, 0))],
        out_specs=pl.BlockSpec((None, ts, H), lambda b, s: (b, s, 0)),
        compiler_params=cp2,
    )(tok, fp['pos_emb'], fp['typ_row'], fp['emb_ln_w'], fp['emb_ln_b'])

    x = x3.reshape(R, H)                            # bf16 activations

    # ---- transformer blocks ----
    for blk in fp['blocks']:
        # fused QKV projection (row-tiled)
        q, k, v = pl.pallas_call(
            qkv_proj_kernel,
            out_shape=(jax.ShapeDtypeStruct((R, H), bf16),) * 3,
            grid=(R // tr,),
            in_specs=[row_spec,
                      const1((H, 3 * H)),
                      const1((1, 3 * H))],
            out_specs=(row_spec, row_spec, row_spec),
            compiler_params=cp1,
        )(x, blk['w_qkv'], blk['b_qkv'])

        # head-major views (cheap XLA transposes; avoids in-kernel relayouts)
        def heads_major(t):
            return t.reshape(B, S, num_heads, hd).transpose(0, 2, 1, 3)

        qh, kh, vh = heads_major(q), heads_major(k), heads_major(v)

        # attention core, all heads batched, tiled over (batch, query tile)
        heads = pl.pallas_call(
            attention_kernel,
            out_shape=jax.ShapeDtypeStruct((B, num_heads, S, hd), bf16),
            grid=(B, S // tq),
            in_specs=[pl.BlockSpec((None, num_heads, tq, hd),
                                   lambda b, i: (b, 0, i, 0)),
                      pl.BlockSpec((None, num_heads, S, hd),
                                   lambda b, i: (b, 0, 0, 0)),
                      pl.BlockSpec((None, num_heads, S, hd),
                                   lambda b, i: (b, 0, 0, 0))],
            out_specs=pl.BlockSpec((None, num_heads, tq, hd),
                                   lambda b, i: (b, 0, i, 0)),
            compiler_params=cp2,
        )(qh, kh, vh)

        attn = heads.transpose(0, 2, 1, 3).reshape(R, H)   # 'b h s d -> (b s)(h d)'

        # output projection + residual + LayerNorm1 (row-tiled)
        n1 = pl.pallas_call(
            outproj_ln_kernel,
            out_shape=jax.ShapeDtypeStruct((R, H), bf16),
            grid=(R // tr,),
            in_specs=[row_spec, row_spec,
                      const1((H, H)), const1((1, H)),
                      const1((1, H)), const1((1, H))],
            out_specs=row_spec,
            compiler_params=cp1,
        )(attn, x, blk['wo'], blk['bo'], blk['ln1_w'], blk['ln1_b'])

        # MLP + residual + LayerNorm2 (row-tiled)
        x = pl.pallas_call(
            mlp_ln_kernel,
            out_shape=jax.ShapeDtypeStruct((R, H), bf16),
            grid=(R // tr,),
            in_specs=[row_spec,
                      const1((H, I)), const1((1, I)),
                      const1((I, H)), const1((1, H)),
                      const1((1, H)), const1((1, H))],
            out_specs=row_spec,
            compiler_params=cp1,
        )(n1, blk['w1'], blk['b1'], blk['w2'], blk['b2'],
          blk['ln2_w'], blk['ln2_b'])

    # ---- output head: lin + GELU + LayerNorm (row-tiled) ----
    n = pl.pallas_call(
        head_ln_kernel,
        out_shape=jax.ShapeDtypeStruct((R, H), bf16),
        grid=(R // tr,),
        in_specs=[row_spec,
                  const1((H, H)), const1((1, H)),
                  const1((1, H)), const1((1, H))],
        out_specs=row_spec,
        compiler_params=cp1,
    )(x, fp['lin_w'], fp['lin_b'], fp['ln_w'], fp['ln_b'])

    # ---- unembedding: grid only over vocab tiles, activations stay resident ----
    logits = pl.pallas_call(
        unembed_kernel,
        out_shape=jax.ShapeDtypeStruct((R, V_pad), jnp.float32),
        grid=(V_pad // tv,),
        in_specs=[_resident_spec((R, H), lambda j: (0, 0)),
                  pl.BlockSpec((H, tv), lambda j: (0, j)),
                  pl.BlockSpec((1, tv), lambda j: (0, j))],
        out_specs=pl.BlockSpec((R, tv), lambda j: (0, j)),
        compiler_params=cp1,
    )(n, fp['unembed_w'], fp['unembed_b'])

    return logits[:, :V].reshape(B, S, V)


# ----------------------------------- main --------------------------------------

if __name__ == "__main__":
    # small config consistent with the module's constructor
    vocab_size = 64
    hidden_size = 32
    max_position_embeddings = 16
    type_vocab_size = 2
    dropout = 0.0            # dropout is identity in this deterministic forward
    intermediate_size = 64
    num_heads = 4
    num_layers = 2

    batch_size, seq_length = 2, 8

    key = jax.random.PRNGKey(0)
    pkey, ikey = jax.random.split(key)
    params = init_params(pkey, vocab_size, hidden_size,
                         max_position_embeddings, type_vocab_size,
                         intermediate_size, num_layers)
    fwd_params = prepare_params(params, num_heads)
    input_ids = jax.random.randint(ikey, (batch_size, seq_length), 0,
                                   vocab_size, dtype=jnp.int32)

    logits = bert_forward(fwd_params, input_ids, num_heads)
    logits = jax.block_until_ready(logits)
    assert logits.shape == (batch_size, seq_length, vocab_size)
    assert bool(jnp.all(jnp.isfinite(logits)))
    print("KERNEL_OK")
</pallas_src>

<mosaic_0001>
module attributes {stable_mosaic.version = 11 : i64} {
  func.func @probe_kernel(%arg0: i32, %arg1: i32, %arg2: memref<8x128xf32, #tpu.memory_space<vmem>>, %arg3: memref<8x128xf32, #tpu.memory_space<vmem>>) attributes {dimension_semantics = [#tpu.dimension_semantics<arbitrary>, #tpu.dimension_semantics<arbitrary>], iteration_bounds = array<i64: 2, 2>, scalar_prefetch = 0 : i64, scratch_operands = 0 : i64, tpu.core_type = #tpu.core_type<tc>, window_params = [{pipeline_mode = #tpu.pipeline_mode<synchronous>, transform_indices = @transform_0, window_bounds = array<i64: 8, 128>}, {pipeline_mode = #tpu.pipeline_mode<synchronous>, transform_indices = @transform_1, window_bounds = array<i64: 8, 128>}]} {
    %c0 = arith.constant 0 : index
    %c0_0 = arith.constant 0 : index
    %0 = vector.load %arg2[%c0, %c0_0] : memref<8x128xf32, #tpu.memory_space<vmem>>, vector<8x128xf32>
    %cst = arith.constant 1.000000e+00 : f32
    %1 = vector.broadcast %cst : f32 to vector<8x128xf32>
    %2 = arith.addf %0, %1 : vector<8x128xf32>
    %c0_1 = arith.constant 0 : index
    %c0_2 = arith.constant 0 : index
    %3 = vector.load %arg3[%c0_1, %c0_2] : memref<8x128xf32, #tpu.memory_space<vmem>>, vector<8x128xf32>
    tpu.vector_store %arg3[%c0_1, %c0_2], %2 {strides = array<i32>} : memref<8x128xf32, #tpu.memory_space<vmem>>, vector<8x128xf32>,
    return
  }
  func.func @transform_0(%arg0: i32, %arg1: i32) -> (i32, i32) {
    %c0_i32 = arith.constant 0 : i32
    %c0_i32_0 = arith.constant 0 : i32
    %c0_i32_1 = arith.constant 0 : i32
    return %c0_i32, %c0_i32_0 : i32, i32
  }
  func.func @transform_1(%arg0: i32, %arg1: i32) -> (i32, i32) {
    %c0_i32 = arith.constant 0 : i32
    %c0_i32_0 = arith.constant 0 : i32
    %c0_i32_1 = arith.constant 0 : i32
    return %c0_i32, %c0_i32_0 : i32, i32
  }
}

module attributes {stable_mosaic.version = 11 : i64} {
  func.func @embed_ln_kernel(%arg0: i32, %arg1: i32, %arg2: memref<1x8x32xf32, #tpu.memory_space<vmem>>, %arg3: memref<8x32xf32, #tpu.memory_space<vmem>>, %arg4: memref<1x32xf32, #tpu.memory_space<vmem>>, %arg5: memref<1x32xf32, #tpu.memory_space<vmem>>, %arg6: memref<1x32xf32, #tpu.memory_space<vmem>>, %arg7: memref<1x8x32xbf16, #tpu.memory_space<vmem>>) attributes {dimension_semantics = [#tpu.dimension_semantics<parallel>, #tpu.dimension_semantics<parallel>], iteration_bounds = array<i64: 2, 1>, scalar_prefetch = 0 : i64, scratch_operands = 0 : i64, tpu.core_type = #tpu.core_type<tc>, window_params = [{transform_indices = @transform_0, window_bounds = array<i64: 1, 8, 32>}, {transform_indices = @transform_1, window_bounds = array<i64: 8, 32>}, {pipeline_mode = #tpu.pipeline_mode<synchronous>, transform_indices = @transform_2, window_bounds = array<i64: 1, 32>}, {pipeline_mode = #tpu.pipeline_mode<synchronous>, transform_indices = @transform_3, window_bounds = array<i64: 1, 32>}, {pipeline_mode = #tpu.pipeline_mode<synchronous>, transform_indices = @transform_4, window_bounds = array<i64: 1, 32>}, {transform_indices = @transform_5, window_bounds = array<i64: 1, 8, 32>}]} {
    %c0 = arith.constant 0 : index
    %c0_0 = arith.constant 0 : index
    %c0_1 = arith.constant 0 : index
    %0 = vector.load %arg2[%c0, %c0_0, %c0_1] : memref<1x8x32xf32, #tpu.memory_space<vmem>>, vector<1x8x32xf32>
    %1 = vector.shape_cast %0 : vector<1x8x32xf32> to vector<8x32xf32>
    %c0_2 = arith.constant 0 : index
    %c0_3 = arith.constant 0 : index
    %2 = vector.load %arg3[%c0_2, %c0_3] : memref<8x32xf32, #tpu.memory_space<vmem>>, vector<8x32xf32>
    %3 = arith.addf %1, %2 : vector<8x32xf32>
    %c0_4 = arith.constant 0 : index
    %c0_5 = arith.constant 0 : index
    %4 = vector.load %arg4[%c0_4, %c0_5] : memref<1x32xf32, #tpu.memory_space<vmem>>, vector<1x32xf32>
    %5 = vector.broadcast %4 : vector<1x32xf32> to vector<8x32xf32>
    %6 = arith.addf %3, %5 : vector<8x32xf32>
    %c0_6 = arith.constant 0 : index
    %c0_7 = arith.constant 0 : index
    %7 = vector.load %arg5[%c0_6, %c0_7] : memref<1x32xf32, #tpu.memory_space<vmem>>, vector<1x32xf32>
    %c0_8 = arith.constant 0 : index
    %c0_9 = arith.constant 0 : index
    %8 = vector.load %arg6[%c0_8, %c0_9] : memref<1x32xf32, #tpu.memory_space<vmem>>, vector<1x32xf32>
    %cst = arith.constant dense<0.000000e+00> : vector<8xf32>
    %9 = vector.multi_reduction <add>, %6, %cst [1] : vector<8x32xf32> to vector<8xf32>
    %10 = vector.shape_cast %9 : vector<8xf32> to vector<8x1xf32>
    %cst_10 = arith.constant 3.200000e+01 : f32
    %11 = vector.broadcast %cst_10 : f32 to vector<8x1xf32>
    %12 = arith.divf %10, %11 : vector<8x1xf32>
    %13 = vector.broadcast %12 : vector<8x1xf32> to vector<8x32xf32>
    %14 = arith.subf %6, %13 : vector<8x32xf32>
    %15 = arith.mulf %14, %14 : vector<8x32xf32>
    %cst_11 = arith.constant dense<0.000000e+00> : vector<8xf32>
    %16 = vector.multi_reduction <add>, %15, %cst_11 [1] : vector<8x32xf32> to vector<8xf32>
    %17 = vector.shape_cast %16 : vector<8xf32> to vector<8x1xf32>
    %cst_12 = arith.constant 3.200000e+01 : f32
    %18 = vector.broadcast %cst_12 : f32 to vector<8x1xf32>
    %19 = arith.divf %17, %18 : vector<8x1xf32>
    %cst_13 = arith.constant 9.99999974E-6 : f32
    %20 = vector.broadcast %cst_13 : f32 to vector<8x1xf32>
    %21 = arith.addf %19, %20 : vector<8x1xf32>
    %22 = math.rsqrt %21 : vector<8x1xf32>
    %23 = vector.broadcast %22 : vector<8x1xf32> to vector<8x32xf32>
    %24 = arith.mulf %14, %23 : vector<8x32xf32>
    %25 = vector.broadcast %7 : vector<1x32xf32> to vector<8x32xf32>
    %26 = arith.mulf %24, %25 : vector<8x32xf32>
    %27 = vector.broadcast %8 : vector<1x32xf32> to vector<8x32xf32>
    %28 = arith.addf %26, %27 : vector<8x32xf32>
    %29 = arith.truncf %28 : vector<8x32xf32> to vector<8x32xbf16>
    %c0_14 = arith.constant 0 : index
    %c0_15 = arith.constant 0 : index
    %c0_16 = arith.constant 0 : index
    %30 = vector.load %arg7[%c0_14, %c0_15, %c0_16] : memref<1x8x32xbf16, #tpu.memory_space<vmem>>, vector<1x8x32xbf16>
    %31 = vector.shape_cast %30 : vector<1x8x32xbf16> to vector<8x32xbf16>
    %32 = vector.shape_cast %29 : vector<8x32xbf16> to vector<1x8x32xbf16>
    tpu.vector_store %arg7[%c0_14, %c0_15, %c0_16], %32 {strides = array<i32>} : memref<1x8x32xbf16, #tpu.memory_space<vmem>>, vector<1x8x32xbf16>,
    return
  }
  func.func @transform_0(%arg0: i32, %arg1: i32) -> (i32, i32, i32) {
    %c0_i32 = arith.constant 0 : i32
    %c0_i32_0 = arith.constant 0 : i32
    return %arg0, %arg1, %c0_i32 : i32, i32, i32
  }
  func.func @transform_1(%arg0: i32, %arg1: i32) -> (i32, i32) {
    %c0_i32 = arith.constant 0 : i32
    %c0_i32_0 = arith.constant 0 : i32
    return %arg1, %c0_i32 : i32, i32
  }
  func.func @transform_2(%arg0: i32, %arg1: i32) -> (i32, i32) {
    %c0_i32 = arith.constant 0 : i32
    %c0_i32_0 = arith.constant 0 : i32
    %c0_i32_1 = arith.constant 0 : i32
    return %c0_i32, %c0_i32_0 : i32, i32
  }
  func.func @transform_3(%arg0: i32, %arg1: i32) -> (i32, i32) {
    %c0_i32 = arith.constant 0 : i32
    %c0_i32_0 = arith.constant 0 : i32
    %c0_i32_1 = arith.constant 0 : i32
    return %c0_i32, %c0_i32_0 : i32, i32
  }
  func.func @transform_4(%arg0: i32, %arg1: i32) -> (i32, i32) {
    %c0_i32 = arith.constant 0 : i32
    %c0_i32_0 = arith.constant 0 : i32
    %c0_i32_1 = arith.constant 0 : i32
    return %c0_i32, %c0_i32_0 : i32, i32
  }
  func.func @transform_5(%arg0: i32, %arg1: i32) -> (i32, i32, i32) {
    %c0_i32 = arith.constant 0 : i32
    %c0_i32_0 = arith.constant 0 : i32
    return %arg0, %arg1, %c0_i32 : i32, i32, i32
  }
}

</mosaic_0001>

<bundles_post_ra>
// kernel: tpu_custom_call.1
= control target key start
LH: loop header
LB: loop body
LE: loop exit
PB: predicated region body
PF: predicated region fallthrough
CT: control target
= control target key end

     0   :  { %6 = vsyncpa [#allocation3], 0  ;;  %s299_s0 = inlined_call_operand.hbm [shape: f32[8,128], index: 0, kind: input, shape index: {}]   ;;  %s300_s1 = inlined_call_operand.hbm [shape: f32[8,128], index: 1, kind: output, shape index: {}]  }
   0x1   :  { %7 = vsyncpa [#allocation4], 0  ;;  %s282_s6 = smov 0  }
   0x2 LB: > { %s161_s7 = sadd.s32 4294967295, %s268_s6   ;;  %p162_p0 = scmp.ge.s32.totalorder %s268_s6, 1  ;;  %s268_s6 = sphi %s282_s6, %s13_s6  }
   0x3   : > { %p72_p1 = scmp.lt.s32.totalorder %s268_s6, 5  ;;  %s84_s10 = sshll.u32 %s299_s0, 4  ;;  %s85_s10 = int_to_ptr.hbm [resolvable:$true] %s84_s10 }
   0x4   : > { %p182_p3 = scmp.eq.s32.totalorder %s161_s7, 0  ;;  %s270_s11 = smov [#allocation2]  }
   0x5   : > { %p73_p2 = pnand %p162_p0, %p72_p1  ;;  %s86_s12 = sshll.u32 %s270_s11, 4  ;;  %s87_s12 = int_to_ptr.vmem [resolvable:$true] %s86_s12 }
   0x7   : > { %p178_p4 = pneg %p73_p2  ;;  %99 = sbr.rel (%p73_p2) target bundleno = 20 (0x14), region = 24 }
   0x9   : > { %p179_p5 = pnand %p182_p3, %p178_p4 }
   0xb   : > { %181 = dma.hbm_to_vmem [thread:$0]  (!%p179_p5), %s85_s10, 128, %s87_s12, [#allocation3]  }
   0xc   : > { %259 = dma.done.wait (%p182_p3), [#allocation3], 128  }
   0xd   : > { %261 = vsyncadd (%p182_p3), [#allocation3], 4294967168  ;;  %s271_s13 = smov [#allocation5]   ;;  %s121_s17 = sshll.u32 %s300_s1, 4  ;;  %v110_v0 = vld [vmem:[#allocation2] sm:$0xff]  ;;  %s122_s17 = int_to_ptr.hbm [resolvable:$true] %s121_s17 }
   0xe   : > { %s119_s14 = sshll.u32 %s271_s13, 4  ;;  %p184_p6 = scmp.eq.s32.totalorder %s161_s7, 3  ;;  %v111_v1 = vadd.f32 1.0, %v110_v0  ;;  %s120_s14 = int_to_ptr.vmem [resolvable:$true] %s119_s14 }
  0x10   : > { %112 = vst [vmem:[#allocation5] sm:$0xff] %v111_v1 }
  0x11   : > { %175 = dma.vmem_to_hbm [thread:$0]  (%p184_p6), %s120_s14, 128, %s122_s17, [#allocation4]  }
  0x12   : > { %263 = dma.done.wait (%p184_p6), [#allocation4], 128  }
  0x13   : > { %265 = vsyncadd (%p184_p6), [#allocation4], 4294967168 }
  0x14 PF: > { %s13_s6 = sadd.s32 1, %s268_s6  }
  0x15   : > { %p10_p7 = scmp.ge.s32.totalorder %s13_s6, 6  }
  0x17   :  { %12 = sbr.rel (!%p10_p7) target bundleno = 2 (0x2), region = 53 }
  0x1c   :  { %135 = vsyncpa [#allocation3], 1 }
  0x1d   :  { %137 = vsyncpa [#allocation3 + $0x1], 1 }
  0x1e   :  { %138 = vsyncpa [#allocation4], 1 }
  0x1f   :  { %140 = vsyncpa [#allocation4 + $0x1], 1 }

// kernel: tpu_custom_call.1
= control target key start
LH: loop header
LB: loop body
LE: loop exit
PB: predicated region body
PF: predicated region fallthrough
CT: control target
= control target key end

     0   :  { %s878_s0 = inlined_call_operand.hbm [shape: f32[2,8,32], index: 0, kind: input, shape index: {}]   ;;  %s879_s1 = inlined_call_operand.hbm [shape: f32[16,32], index: 1, kind: input, shape index: {}]   ;;  %s880_s2 = inlined_call_operand.vmem [shape: f32[1,32], index: 2, kind: input, shape index: {}]   ;;  %s881_s3 = inlined_call_operand.vmem [shape: f32[1,32], index: 3, kind: input, shape index: {}]   ;;  %s882_s4 = inlined_call_operand.vmem [shape: f32[1,32], index: 4, kind: input, shape index: {}]   ;;  %s883_s5 = inlined_call_operand.hbm [shape: bf16[2,8,32], index: 5, kind: output, shape index: {}]  }
   0x1   :  { %884 = sst [smem:[#allocation11_spill]] %s879_s1 }
   0x2   :  { %10 = vsyncpa [#allocation3], 0 }
   0x3   :  { %12 = vsyncpa [#allocation3 + $0x1], 0 }
   0x4   :  { %13 = vsyncpa [#allocation6], 0 }
   0x5   :  { %14 = vsyncpa [#allocation4], 0 }
   0x6   :  { %16 = vsyncpa [#allocation4 + $0x1], 0  ;;  %s717_s18 = smov 0   ;;  %s719_s19 = smov 0  }
   0x7   :  { %s721_s20 = smov 0   ;;  %s723_s21 = smov 0  }
   0x8   :  { %s725_s22 = smov 0   ;;  %s727_s23 = smov 0  }
   0x9 LB: > { %s441_s24 = sadd.s32 4294967295, %s683_s23   ;;  %s442_s25 = sadd.s32 4294967294, %s683_s23   ;;  %s683_s23 = sphi %s727_s23, %s22_s23   ;;  %s679_s22 = sphi %s725_s22, %s897_s22   ;;  %s675_s21 = sphi %s723_s21, %s896_s21   ;;  %s671_s20 = sphi %s721_s20, %s895_s20   ;;  %s667_s19 = sphi %s719_s19, %s894_s19   ;;  %s663_s18 = sphi %s717_s18, %s893_s18  }
   0xa   : > { %p56_p0 = scmp.ne.s32.totalorder %s667_s19, %s663_s18  ;;  %p751_p1 = scmp.eq.s32.totalorder %s441_s24, 0 }
   0xb   : > { %p755_p2 = scmp.eq.s32.totalorder %s441_s24, 1  ;;  %p177_p3 = scmp.eq.s32.totalorder %s442_s25, 1 }
   0xc   : > { %p761_p4 = por %p751_p1, %p56_p0  ;;  %p443_p5 = scmp.ge.s32.totalorder %s683_s23, 1 }
   0xd   : > { %p766_p6 = por %p177_p3, %p56_p0  ;;  %p184_p7 = scmp.lt.s32.totalorder %s683_s23, 3 }
   0xe   : > { %s889_s1 = sld [smem:[#allocation11_spill]]  ;;  %p445_p9 = scmp.ge.s32.totalorder %s683_s23, 2 }
   0xf   : > { %p774_p8 = pnand %p443_p5, %p184_p7  ;;  %s685_s9 = smov [#allocation5]  }
  0x10   : > { %s200_s10 = sshll.u32 %s685_s9, 4  ;;  %s34_s11 = sadd.s32 1, %s679_s22  ;;  %s201_s10 = int_to_ptr.vmem [resolvable:$true] %s200_s10 }
  0x11   : > { %p464_p10 = pneg %p774_p8  ;;  %p36_p12 = scmp.ge.s32.totalorder %s34_s11, 2 }
  0x12   : > { %s43_s12 = sadd.s32 1, %s671_s20  ;;  %p50_p13 = scmp.ne.s32.totalorder %s671_s20, %s667_s19 }
  0x13   : > { %p465_p11 = pnand %p464_p10, %p751_p1  ;;  %p51_p0 = scmp.eq.s32.totalorder %s683_s23, 0 }
  0x14   : > { %s198_s7 = sshll.u32 %s889_s1, 4  ;;  %s899_s11 = smov (%p36_p12, %s34_s11), 0  ;;  %s199_s7 = int_to_ptr.hbm [resolvable:$true] %s198_s7 }
  0x15   : > { %467 = dma.hbm_to_vmem [thread:$0]  (!%p465_p11), %s199_s7, 128, %s201_s10, [#allocation6]  }
  0x16   : > { %p790_p3 = por %p51_p0, %p50_p13  ;;  %p796_p5 = por %p755_p2, %p50_p13 }
  0x17   : > { %s38_s15 = ssub.s32 %s679_s22, %s899_s11  ;;  %p477_p7 = scmp.lt.s32.totalorder %s683_s23, 2 }
  0x18   : > { %p41_p10 = scmp.eq.s32.totalorder %s38_s15, 0  ;;  %s220_s16 = sand.u32 1, %s671_s20  }
  0x19   : > { %s446_s17 = sshll.u32 %s220_s16, 3  ;;  %s447_s25 = sshll.u32 %s679_s22, 3 }
  0x1a   : > { %s805_s24 = scalar_select %p41_p10, %s671_s20, %s43_s12  }
  0x1b   : > { %s229_s7 = scalar_lea.hbm %s878_s0, %s447_s25  ;;  %s224_s9 = scalar_lea.vmem [#allocation2], %s446_s17 }
  0x1c   : > { %s233_s10 = sshll.u32 %s224_s9, 4  ;;  %s231_s27 = sshll.u32 %s229_s7, 4  ;;  %s234_s10 = int_to_ptr.vmem [resolvable:$true] %s233_s10  ;;  %s232_s27 = int_to_ptr.hbm [resolvable:$true] %s231_s27 }
  0x1d   : > { %p469_p2 = pnand %p477_p7, %p790_p3  ;;  %s221_s1 = scalar_lea.sflag [#allocation3], %s220_s16 }
  0x1e   : > { %242 = sbr.rel (%p774_p8) target bundleno = 316 (0x13c), region = 40  ;;  %s816_s12 = sand.u32 (!%p774_p8), 1, %s667_s19  }
  0x1f   : > { %471 = dma.hbm_to_vmem [thread:$0]  (!%p469_p2), %s232_s27, 128, %s234_s10, %s221_s1  }
  0x20   : > { %s449_s15 = sshll.u32 (!%p774_p8), %s816_s12, 3  ;;  %s245_s25 = scalar_lea.sflag (!%p774_p8), [#allocation3], %s816_s12 }
  0x21   : > { %s248_s17 = scalar_lea.vmem (!%p774_p8), [#allocation2], %s449_s15 }
  0x23   : > { %650 = dma.done.wait (%p761_p4), %s245_s25, 128  }
  0x24   : > { %652 = vsyncadd (%p761_p4), %s245_s25, 4294967168 }
  0x25   : > { %654 = dma.done.wait (%p751_p1), [#allocation6], 128  }
  0x26   : > { %656 = vsyncadd (%p751_p1), [#allocation6], 4294967168  ;;  %v281_v0 = vld [vmem:[%s248_s17] sm:$0xff]  ;;  %v282_v1 = vld [vmem:[#allocation5] sm:$0xff]  ;;  %vm291_vm0 = vcmask 261120   ;;  %v686_v6 = vmov 32.0  }
  0x27   : > { %v283_v2 = vadd.f32 %v282_v1, %v281_v0  ;;  %v530_v3 = vld [vmem:[%s880_s2] ss:$0 sm:$0xff]  ;;  %533 = vrcp.f32 %v686_v6  ;;  %s451_s26 = sshll.u32 %s816_s12, 2  ;;  %s453_s28 = sshll.u32 %s675_s21, 2  ;;  %vm330_vm5 = vcmask 257024  }
  0x28   : > { %v531_v27 = vld [vmem:[%s881_s3] ss:$0 sm:$0xff]  ;;  %s344_s10 = scalar_lea.hbm %s883_s5, %s453_s28  ;;  %s280_s27 = scalar_lea.vmem [#allocation7], %s451_s26 }
  0x29   : > { %v288_v4 = vadd.f32 %v530_v3, %v283_v2  ;;  %v532_v29 = vld [vmem:[%s882_s4] ss:$0 sm:$0xff]  ;;  %s346_s21 = sshll.u32 %s280_s27, 4  ;;  %s348_s15 = sshll.u32 %s344_s10, 4  ;;  %s347_s21 = int_to_ptr.vmem [resolvable:$true] %s346_s21  ;;  %s349_s15 = int_to_ptr.hbm [resolvable:$true] %s348_s15 }
  0x2a   : > { %s333_s25 = scalar_lea.sflag [#allocation4], %s816_s12  ;;  %s611_s17 = sshra.s32 %s349_s15, 4  ;;  %s612_s17 = int_to_ptr.hbm [resolvable:$true] %s611_s17 }
  0x2b   : > { %v292_v5 = vsel %vm291_vm0, %v288_v4, 0.0  ;;  %s613_s1 = scalar_lea.hbm %s612_s17, 4  ;;  %s617_s26 = scalar_lea.hbm %s883_s5, 8 }
  0x2c   : > { %293 = vadd.xlane.f32.xlu0 %v292_v5  ;;  %p614_p1 = scmp.ne.s32.totalorder %s612_s17, %s613_s1  ;;  %p618_p11 = scmp.lt.s32.totalorder %s612_s17, %s883_s5 }
  0x2d   : > { %v534_v7 = vpop.eup %533  ;;  %p619_p12 = scmp.lt.s32.totalorder %s617_s26, %s613_s1 }
  0x2e   : > { %v296_v8 = vmul.f32 32.0, %v534_v7  ;;  %vm300_vm1 = vweird.f32 %v534_v7  ;;  %p615_p4 = pnand %p614_p1, %p796_p5 }
  0x2f   : > { %p620_p13 = por %p619_p12, %p618_p11 }
  0x30   : > { %v297_v9 = vsub.f32 1.0, %v296_v8  ;;  %p616_p8 = pneg %p615_p4 }
  0x32   : > { %v298_v10 = vmul.f32 %v534_v7, %v297_v9  ;;  %p621_p0 = pnand %p620_p13, %p616_p8 }
  0x34   : > { %v299_v11 = vadd.f32 %v534_v7, %v298_v10 }
  0x36   : > { %v301_v12 = vsel %vm300_vm1, %v534_v7, %v299_v11 }
  0x9f   : > { %v294_v13 = vpop.xlane.xlu0 %293 }
  0xa0   : > { %v302_v14 = vmul.f32 %v301_v12, %v294_v13 }
  0xa2   : > { %v303_v15 = vsub.f32 %v288_v4, %v302_v14 }
  0xa4   : > { %v304_v16 = vmul.f32 %v303_v15, %v303_v15 }
  0xa6   : > { %v305_v17 = vsel %vm291_vm0, %v304_v16, 0.0 }
  0xa7   : > { %306 = vadd.xlane.f32.xlu0 %v305_v17 }
 0x11a   : > { %v307_v18 = vpop.xlane.xlu0 %306 }
 0x11b   : > { %v308_v19 = vmul.f32 %v307_v18, %v301_v12 }
 0x11d   : > { %v309_v20 = vadd.f32 1e-05, %v308_v19 }
 0x11f   : > { %535 = vrsqrt.f32 %v309_v20  ;;  %vm316_vm3 = vweird.f32 %v309_v20 }
 0x125   : > { %v536_v21 = vpop.eup %535 }
 0x126   : > { %v311_v22 = vmul.f32 %v536_v21, %v309_v20  ;;  %vm317_vm2 = vweird.f32 %v536_v21 }
 0x127   : > { %vm318_vm4 = vmor %vm316_vm3, %vm317_vm2 }
 0x128   : > { %v312_v23 = vmul.f32 %v536_v21, %v311_v22 }
 0x12a   : > { %v313_v24 = vmul.f32 0.5, %v312_v23 }
 0x12c   : > { %v314_v25 = vsub.f32 1.5, %v313_v24 }
 0x12e   : > { %v315_v26 = vmul.f32 %v536_v21, %v314_v25 }
 0x130   : > { %v319_v28 = vsel %vm318_vm4, %v536_v21, %v315_v26 }
 0x131   : > { %v320_v30 = vmul.f32 %v319_v28, %v303_v15 }
 0x133   : > { %v324_v31 = vmul.f32 %v531_v27, %v320_v30 }
 0x135   : > { %v328_v32 = vadd.f32 %v532_v29, %v324_v31 }
 0x137   : > { %v329_v33 = vpack.c.bf16 %v328_v32, %v328_v32 }
 0x139   : > { %331 = vst.msk [vmem:[%s280_s27] sm:$0xf] %vm330_vm5, %v329_v33 }
 0x13a   : > { %624 = shalt.err (!%p621_p0)
}
 0x13b   : > { %462 = dma.vmem_to_hbm [thread:$0]  (%p796_p5), %s347_s21, 64, %s349_s15, %s333_s25  }
 0x13c PF: > { %s360_s12 = sand.u32 1, %s663_s18   ;;  %p473_p3 = pnand %p445_p9, %p766_p6 }
 0x13d   : > { %s361_s30 = scalar_lea.sflag [#allocation4], %s360_s12 }
 0x13e   : > { %p474_p7 = pneg %p473_p3 }
 0x140   : > { %658 = dma.done.wait (%p474_p7), %s361_s30, 64  }
 0x141   : > { %660 = vsyncadd (%p474_p7), %s361_s30, 4294967232  ;;  %s22_s23 = sadd.s32 1, %s683_s23   ;;  %s893_s18 = smov %s667_s19 }
 0x142   : > { %p19_p10 = scmp.ge.s32.totalorder %s22_s23, 4   ;;  %s894_s19 = smov %s671_s20 }
 0x143   : > { %s895_s20 = smov %s805_s24  ;;  %s896_s21 = smov %s679_s22 }
 0x144   : > { %s897_s22 = smov %s899_s11  ;;  %21 = sbr.rel (!%p19_p10) target bundleno = 9 (0x9), region = 90 }
 0x149   :  { %367 = vsyncpa [#allocation3], 1 }
 0x14a   :  { %369 = vsyncpa [#allocation3 + $0x1], 1 }
 0x14b   :  { %370 = vsyncpa [#allocation6], 1 }
 0x14c   :  { %371 = vsyncpa [#allocation4], 1 }
 0x14d   :  { %373 = vsyncpa [#allocation4 + $0x1], 1 }

</bundles_post_ra>
